<compile_context>
chip_gen: v6e
topology: v6e:2x2x1
jax: 0.10.0
libtpu: 0.0.40
codegen_flags: <defaults>
</compile_context>

<pallas_src>
import inspect

import jax
import jax.numpy as jnp
from jax.experimental import pallas as pl
from jax.experimental.pallas import tpu as pltpu

# --------------------------- problem constants ---------------------------
CIN, COUT, KH, KW, GROUPS = 64, 128, 3, 3, 4
CIN_G = CIN // GROUPS        # 16
COUT_G = COUT // GROUPS      # 32
TAPS = KH * KW               # 9
KDIM = TAPS * CIN            # 576 = contraction depth after folding all taps


# ----------------------------- small helpers ------------------------------
def _single_buffer_kwargs():
    """pipeline_mode=pl.Buffered(1) for constant-index blocks, when supported.

    The weight/bias index_maps are constant, so their DMA is already elided across
    grid steps; a single buffer removes the redundant second VMEM copy (matters once
    activation tiles are sized near the v7x 64 MiB limit).  Guarded so the kernel
    still builds on jax versions without BlockSpec.pipeline_mode.
    """
    try:
        if hasattr(pl, "Buffered") and (
                "pipeline_mode" in inspect.signature(pl.BlockSpec).parameters):
            return {"pipeline_mode": pl.Buffered(1)}
    except (TypeError, ValueError):
        pass
    return {}


def _pick_batch_block(n_images):
    """Images folded per grid step: amortize ~0.35us/step overhead, but keep the
    'parallel' grid axis length a multiple of 2 when N >= 2 (v7x has 2 TCs)."""
    nb = max(1, n_images // 2) if n_images >= 2 else 1
    nb = min(nb, 8)                      # keep the static unroll & x slab modest
    while n_images % nb:                 # exact blocks -> exact BlockSpec tiling
        nb -= 1
    return nb


# ------------------------------ Pallas kernel ----------------------------
def _make_conv_kernel(NB, W, M_full):
    def conv_kernel(x_ref, w_ref, b_ref, o_ref):
        # x_ref: (NB, H*W, CIN)    bf16  flattened-HW activations (lane dim = CIN)
        # w_ref: (KDIM, COUT)      bf16  block-diagonal (groups) weights, tap-major rows
        # b_ref: (1, COUT)         f32
        # o_ref: (NB, M_full, COUT) f32  window-start-major rows (junk rows included)
        bias = b_ref[...]                                    # (1, 128)
        for nb in range(NB):                                 # static unroll, NB small
            xf = x_ref[nb]                                   # (H*W, CIN)
            # Implicit im2col, VMEM-only: tap (kh, kw) for every window start is a
            # contiguous sublane slice; lane-concat the 9 CIN-wide slices to fold all
            # taps into one K=576 contraction (fewer vmatmul pushes, full-lane LHS).
            taps = [xf[kh * W + kw: kh * W + kw + M_full, :]
                    for kh in range(KH) for kw in range(KW)]  # each (M_full, 64)
            patches = jnp.concatenate(taps, axis=-1)          # (M_full, 576) bf16
            acc = jnp.dot(patches, w_ref[...],
                          preferred_element_type=jnp.float32)  # MXU, f32 accumulate
            # One dense, unmasked, 128-lane-wide slab store per image.
            o_ref[nb] = (acc + bias).astype(o_ref.dtype)
    return conv_kernel


def _conv_pallas(x_flat, w_flat, b2d, W, M_full):
    N, HW, _ = x_flat.shape
    NB = _pick_batch_block(N)
    G = N // NB
    single_buf = _single_buffer_kwargs()

    # Advisory cost (counts block-diagonal zeros and the junk window rows).
    flops = 2 * N * M_full * KDIM * COUT
    bytes_accessed = (x_flat.size * 2 + w_flat.size * 2 + b2d.size * 4
                      + N * M_full * COUT * 4)

    return pl.pallas_call(
        _make_conv_kernel(NB, W, M_full),
        out_shape=jax.ShapeDtypeStruct((N, M_full, COUT), jnp.float32),
        grid_spec=pltpu.PrefetchScalarGridSpec(
            num_scalar_prefetch=0,
            grid=(G,),
            in_specs=[
                # Activations: NB whole images per step (trailing dims = full dims).
                pl.BlockSpec((NB, HW, CIN), lambda n: (n, 0, 0)),
                # Resident weights / bias: constant index_map, single-buffered.
                pl.BlockSpec((KDIM, COUT), lambda n: (0, 0), **single_buf),
                pl.BlockSpec((1, COUT), lambda n: (0, 0), **single_buf),
            ],
            out_specs=pl.BlockSpec((NB, M_full, COUT), lambda n: (n, 0, 0)),
        ),
        compiler_params=pltpu.CompilerParams(
            # Batch-block axis is independent -> both v7x TensorCores get work.
            dimension_semantics=("parallel",)),
        cost_estimate=pl.CostEstimate(flops=flops, transcendentals=0,
                                      bytes_accessed=bytes_accessed),
    )(x_flat, w_flat, b2d)


# ------------------------------- glue (JAX) -------------------------------
def _block_diag_weights(weight):
    """torch (COUT, CIN_G, KH, KW) -> (TAPS*CIN, COUT), block-diagonal over groups.

    Rows are ordered tap-major then input-channel, matching the kernel's patch
    lane-concat order, so the 4 groups are fused into one GEMM.
    """
    w = weight.reshape(GROUPS, COUT_G, CIN_G, TAPS)        # [g, co_g, ci, t]
    w = w.transpose(3, 0, 2, 1)                            # [t, g, ci, co_g]
    w_bd = jnp.zeros((TAPS, CIN, COUT), dtype=jnp.float32)
    for g in range(GROUPS):                                # trace-time, 4 iterations
        w_bd = w_bd.at[:, g * CIN_G:(g + 1) * CIN_G,
                       g * COUT_G:(g + 1) * COUT_G].set(w[:, g])
    return w_bd.reshape(KDIM, COUT)                        # (576, 128)


def myconv_forward(x, weight, bias):
    """x: (N, 64, H, W) f32; weight: (128, 16, 3, 3); bias: (128,) -> (N, 128, OH, OW)."""
    N, _, H, W = x.shape
    OH, OW = H - KH + 1, W - KW + 1
    M_full = (OH - 1) * W + OW       # contiguous window starts incl. row-wrap junk

    # NCHW -> flattened NHWC with the bf16 cast fused into the same XLA pass
    # (lane dim = CIN).  bf16 is the native MXU path on v5e/v6e/v7x and halves the
    # activation VMEM/vreg footprint; accumulation stays f32 inside the kernel.
    x_flat = jnp.transpose(x, (0, 2, 3, 1)).reshape(N, H * W, CIN).astype(jnp.bfloat16)
    w_flat = _block_diag_weights(weight).astype(jnp.bfloat16)   # 144 KiB resident
    b2d = bias.reshape(1, COUT).astype(jnp.float32)

    out_full = _conv_pallas(x_flat, w_flat, b2d, W, M_full)     # (N, M_full, 128) f32

    # Drop the (W-OW) junk window-starts at the end of each output row (cheap static
    # wrapper slices).  NHWC consumers should stop at out_nhwc; the final transpose
    # exists only to preserve the PyTorch module's NCHW output contract.
    out_nhwc = jnp.stack([out_full[:, oh * W: oh * W + OW, :] for oh in range(OH)],
                         axis=1)                                 # (N, OH, OW, 128)
    return jnp.transpose(out_nhwc, (0, 3, 1, 2))                 # (N, 128, OH, OW)


# --------------------------------- main -----------------------------------
if __name__ == "__main__":
    key = jax.random.PRNGKey(0)
    kx, kw_, kb = jax.random.split(key, 3)

    # matches the sample input: torch.rand(2, 64, 4, 5)
    x = jax.random.uniform(kx, (2, 64, 4, 5), dtype=jnp.float32)

    # deterministic init mimicking torch Conv2d default (kaiming-uniform-ish bounds)
    fan_in = CIN_G * KH * KW
    bound = 1.0 / (fan_in ** 0.5)
    weight = jax.random.uniform(kw_, (COUT, CIN_G, KH, KW),
                                minval=-bound, maxval=bound, dtype=jnp.float32)
    bias = jax.random.uniform(kb, (COUT,), minval=-bound, maxval=bound,
                              dtype=jnp.float32)

    out = jax.jit(myconv_forward)(x, weight, bias)
    out = jax.block_until_ready(out)
    assert out.shape == (2, 128, 2, 3), out.shape

    # Reference: same bf16-quantized operands, full-precision f32 math (matches the
    # kernel's bf16-operand / f32-accumulate contract).
    x_q = x.astype(jnp.bfloat16).astype(jnp.float32)
    w_q = weight.astype(jnp.bfloat16).astype(jnp.float32)
    ref = jax.lax.conv_general_dilated(
        x_q, w_q, window_strides=(1, 1), padding="VALID",
        dimension_numbers=("NCHW", "OIHW", "NCHW"),
        feature_group_count=GROUPS,
        precision=jax.lax.Precision.HIGHEST) + bias[None, :, None, None]
    err = float(jnp.max(jnp.abs(out - ref)))
    assert jnp.allclose(out, ref, atol=2e-3, rtol=2e-3), err

    print("KERNEL_OK")
</pallas_src>

<mosaic_0001>
module attributes {stable_mosaic.version = 11 : i64} {
  func.func @conv_kernel(%arg0: i32, %arg1: memref<1x20x64xbf16, #tpu.memory_space<vmem>>, %arg2: memref<576x128xbf16, #tpu.memory_space<vmem>>, %arg3: memref<1x128xf32, #tpu.memory_space<vmem>>, %arg4: memref<1x8x128xf32, #tpu.memory_space<vmem>>) attributes {dimension_semantics = [#tpu.dimension_semantics<parallel>], iteration_bounds = array<i64: 2>, scalar_prefetch = 0 : i64, scratch_operands = 0 : i64, tpu.core_type = #tpu.core_type<tc>, window_params = [{transform_indices = @transform_0, window_bounds = array<i64: 1, 20, 64>}, {pipeline_mode = #tpu.pipeline_mode<synchronous>, transform_indices = @transform_1, window_bounds = array<i64: 576, 128>}, {pipeline_mode = #tpu.pipeline_mode<synchronous>, transform_indices = @transform_2, window_bounds = array<i64: 1, 128>}, {transform_indices = @transform_3, window_bounds = array<i64: 1, 8, 128>}]} {
    %c0 = arith.constant 0 : index
    %c0_0 = arith.constant 0 : index
    %0 = vector.load %arg3[%c0, %c0_0] : memref<1x128xf32, #tpu.memory_space<vmem>>, vector<1x128xf32>
    %c0_1 = arith.constant 0 : index
    %c0_2 = arith.constant 0 : index
    %c0_3 = arith.constant 0 : index
    %1 = vector.load %arg1[%c0_1, %c0_2, %c0_3] : memref<1x20x64xbf16, #tpu.memory_space<vmem>>, vector<1x20x64xbf16>
    %2 = vector.shape_cast %1 : vector<1x20x64xbf16> to vector<20x64xbf16>
    %3 = vector.extract_strided_slice %2 {offsets = [0, 0], sizes = [8, 64], strides = [1, 1]} : vector<20x64xbf16> to vector<8x64xbf16>
    %4 = vector.extract_strided_slice %2 {offsets = [1, 0], sizes = [8, 64], strides = [1, 1]} : vector<20x64xbf16> to vector<8x64xbf16>
    %5 = vector.extract_strided_slice %2 {offsets = [2, 0], sizes = [8, 64], strides = [1, 1]} : vector<20x64xbf16> to vector<8x64xbf16>
    %6 = vector.extract_strided_slice %2 {offsets = [5, 0], sizes = [8, 64], strides = [1, 1]} : vector<20x64xbf16> to vector<8x64xbf16>
    %7 = vector.extract_strided_slice %2 {offsets = [6, 0], sizes = [8, 64], strides = [1, 1]} : vector<20x64xbf16> to vector<8x64xbf16>
    %8 = vector.extract_strided_slice %2 {offsets = [7, 0], sizes = [8, 64], strides = [1, 1]} : vector<20x64xbf16> to vector<8x64xbf16>
    %9 = vector.extract_strided_slice %2 {offsets = [10, 0], sizes = [8, 64], strides = [1, 1]} : vector<20x64xbf16> to vector<8x64xbf16>
    %10 = vector.extract_strided_slice %2 {offsets = [11, 0], sizes = [8, 64], strides = [1, 1]} : vector<20x64xbf16> to vector<8x64xbf16>
    %11 = vector.extract_strided_slice %2 {offsets = [12, 0], sizes = [8, 64], strides = [1, 1]} : vector<20x64xbf16> to vector<8x64xbf16>
    %12 = tpu.concatenate %3, %4, %5, %6, %7, %8, %9, %10, %11 in 1 : vector<8x64xbf16>, vector<8x64xbf16>, vector<8x64xbf16>, vector<8x64xbf16>, vector<8x64xbf16>, vector<8x64xbf16>, vector<8x64xbf16>, vector<8x64xbf16>, vector<8x64xbf16> -> vector<8x576xbf16>
    %c0_4 = arith.constant 0 : index
    %c0_5 = arith.constant 0 : index
    %13 = vector.load %arg2[%c0_4, %c0_5] : memref<576x128xbf16, #tpu.memory_space<vmem>>, vector<576x128xbf16>
    %cst = arith.constant dense<0.000000e+00> : vector<8x128xf32>
    %14 = tpu.matmul %12, %13, %cst {dimension_numbers = #tpu.dot_dimension_numbers<[1], [0], [0], [1], [0, 0, 1, 1], [], []>} : vector<8x576xbf16>, vector<576x128xbf16>, vector<8x128xf32> -> vector<8x128xf32>
    %15 = vector.broadcast %0 : vector<1x128xf32> to vector<8x128xf32>
    %16 = arith.addf %14, %15 : vector<8x128xf32>
    %c0_6 = arith.constant 0 : index
    %c0_7 = arith.constant 0 : index
    %c0_8 = arith.constant 0 : index
    %17 = vector.load %arg4[%c0_6, %c0_7, %c0_8] : memref<1x8x128xf32, #tpu.memory_space<vmem>>, vector<1x8x128xf32>
    %18 = vector.shape_cast %17 : vector<1x8x128xf32> to vector<8x128xf32>
    %19 = vector.shape_cast %16 : vector<8x128xf32> to vector<1x8x128xf32>
    tpu.vector_store %arg4[%c0_6, %c0_7, %c0_8], %19 {strides = array<i32>} : memref<1x8x128xf32, #tpu.memory_space<vmem>>, vector<1x8x128xf32>,
    return
  }
  func.func @transform_0(%arg0: i32) -> (i32, i32, i32) {
    %c0_i32 = arith.constant 0 : i32
    %c0_i32_0 = arith.constant 0 : i32
    %c0_i32_1 = arith.constant 0 : i32
    return %arg0, %c0_i32, %c0_i32_0 : i32, i32, i32
  }
  func.func @transform_1(%arg0: i32) -> (i32, i32) {
    %c0_i32 = arith.constant 0 : i32
    %c0_i32_0 = arith.constant 0 : i32
    %c0_i32_1 = arith.constant 0 : i32
    return %c0_i32, %c0_i32_0 : i32, i32
  }
  func.func @transform_2(%arg0: i32) -> (i32, i32) {
    %c0_i32 = arith.constant 0 : i32
    %c0_i32_0 = arith.constant 0 : i32
    %c0_i32_1 = arith.constant 0 : i32
    return %c0_i32, %c0_i32_0 : i32, i32
  }
  func.func @transform_3(%arg0: i32) -> (i32, i32, i32) {
    %c0_i32 = arith.constant 0 : i32
    %c0_i32_0 = arith.constant 0 : i32
    %c0_i32_1 = arith.constant 0 : i32
    return %arg0, %c0_i32, %c0_i32_0 : i32, i32, i32
  }
}

</mosaic_0001>

<bundles_post_ra>
// kernel: myconv_forward.1
= control target key start
LH: loop header
LB: loop body
LE: loop exit
PB: predicated region body
PF: predicated region fallthrough
CT: control target
= control target key end

     0   :  { %s894_s12 = smov 0   ;;  %s1047_s0 = inlined_call_operand.vmem [shape: bf16[2,20,64], index: 0, kind: input, shape index: {}]   ;;  %s1048_s1 = inlined_call_operand.vmem [shape: bf16[576,128], index: 1, kind: input, shape index: {}]   ;;  %s1049_s2 = inlined_call_operand.vmem [shape: f32[1,128], index: 2, kind: input, shape index: {}]   ;;  %s1050_s3 = inlined_call_operand.vmem [shape: f32[2,8,128], index: 3, kind: output, shape index: {}]  }
   0x1 LB: > { %s703_s13 = sadd.s32 4294967295, %s869_s12   ;;  %p707_p0 = scmp.ge.s32.totalorder %s869_s12, 1  ;;  %s869_s12 = sphi %s894_s12, %s13_s12  }
   0x2   : > { %p137_p1 = scmp.lt.s32.totalorder %s869_s12, 3 }
   0x4   : > { %p138_p2 = pnand %p707_p0, %p137_p1 }
   0x5   : > { %p160_p3 = scmp.lt.s32.totalorder (!%p138_p2), %s703_s13, 1  ;;  %s871_s19 = smov (!%p138_p2), 64  }
   0x6   : > { %141 = sbr.rel (%p138_p2) target bundleno = 359 (0x167), region = 32 }
   0xb   : > { %v827_v0 = vld [vmem:[%s1048_s1 + $0x78] sm:$0xff]   ;;  %s1052_s13 = smov (!%p160_p3, %s703_s13), 1  ;;  %v830_v3 = vld [vmem:[%s1048_s1 + $0x70] sm:$0xff]   ;;  %v834_v12 = vld [vmem:[%s1048_s1 + $0x68] sm:$0xff]   ;;  %v872_v52 = vmov 0.0   ;;  %vm215_vm0 = vcmask 523264  }
   0xc   : > { %v828_v1 = vld [vmem:[%s1048_s1 + $0x38] sm:$0xff]   ;;  %752 = vmatprep.subr.bf16.mxu0 %v827_v0  ;;  %s813_s20 = smul.u32 12, %s1052_s13  ;;  %v832_v5 = vld [vmem:[%s1048_s1 + $0x30] sm:$0xff]   ;;  %v836_v18 = vld [vmem:[%s1048_s1 + $0x28] sm:$0xff]   ;;  %vm873_vm1 = vmmov 0   ;;  %s709_s18 = sshll.u32 %s1052_s13, 3 }
   0xd   : > { %v829_v2 = vld [vmem:[%s1048_s1 + $0xf8] sm:$0xff]   ;;  %753 = vmatpush3.bf16.msra.mxu0 %v828_v1  ;;  %v833_v11 = vld [vmem:[%s1048_s1 + $0xf0] sm:$0xff]   ;;  %v837_v26 = vld [vmem:[%s1048_s1 + $0xe8] sm:$0xff]   ;;  %s168_s21 = scalar_lea.vmem %s1050_s3, %s709_s18 }
   0xe   : > { %774 = vmatprep.subr.bf16.mxu1 %v829_v2  ;;  %v831_v4 = vld [vmem:[%s1048_s1 + $0xb8] sm:$0xff]   ;;  %s164_s27 = scalar_lea.vmem %s1047_s0, %s813_s20  ;;  %754 = vmatprep.subr.bf16.mxu0 %v830_v3  ;;  %v835_v17 = vld [vmem:[%s1048_s1 + $0xb0] sm:$0xff]   ;;  %v838_v29 = vld [vmem:[%s1048_s1 + $0x60] sm:$0xff]  }
   0xf   : > { %v926_v6 = vld [vmem:[%s164_s27] sm:$0xf]  ;;  %v172_v7 = vld [vmem:[%s164_s27 + $0x4] sm:$0xf]  ;;  %v173_v8 = vld [vmem:[%s164_s27 + $0x8] sm:$0x3]  ;;  %775 = vmatpush3.bf16.msra.mxu1 %v831_v4 }
  0x10   : > { %v929_v9 = vcombine.low %v926_v6, %v172_v7  ;;  %v931_v10 = vcombine.low %v172_v7, %v173_v8  ;;  %776 = vmatprep.subr.bf16.mxu1 %v833_v11  ;;  %v839_v30 = vld [vmem:[%s1048_s1 + $0xa8] sm:$0xff]   ;;  %v840_v33 = vld [vmem:[%s1048_s1 + $0x20] sm:$0xff]   ;;  %v842_v35 = vld [vmem:[%s1048_s1 + $0x58] sm:$0xff]  }
  0x11   : > { %755 = vmatpush3.bf16.msra.mxu0 %v832_v5  ;;  %v841_v34 = vld [vmem:[%s1048_s1 + $0xe0] sm:$0xff]   ;;  %v844_v37 = vld [vmem:[%s1048_s1 + $0x18] sm:$0xff]   ;;  %v846_v39 = vld [vmem:[%s1048_s1 + $0x50] sm:$0xff]  }
  0x12   : > { %v180_v13 = vshrl.u32 %v929_v9, 16  ;;  %v182_v14 = vshll.u32 %v929_v9, 16  ;;  %v205_v15 = vshrl.u32 %v931_v10, 16  ;;  %v208_v16 = vshll.u32 %v931_v10, 16  ;;  %756 = vmatprep.subr.bf16.mxu0 %v834_v12  ;;  %v843_v36 = vld [vmem:[%s1048_s1 + $0xa0] sm:$0xff]   ;;  %v845_v38 = vld [vmem:[%s1048_s1 + $0xd8] sm:$0xff]  }
  0x13   : > { %777 = vmatpush3.bf16.msra.mxu1 %v835_v17  ;;  %v847_v40 = vld [vmem:[%s1048_s1 + $0x98] sm:$0xff]   ;;  %v848_v41 = vld [vmem:[%s1048_s1 + $0x10] sm:$0xff]   ;;  %v850_v43 = vld [vmem:[%s1048_s1 + $0x48] sm:$0xff]   ;;  %v188_v53 = vrot.slane %v929_v9, 1  ;;  %v203_v54 = vrot.slane %v931_v10, 1  ;;  %v194_v59 = vrot.slane %v929_v9, 3 }
  0x14   : > { %v189_v19 = vrot.slane %v180_v13, 2  ;;  %v190_v20 = vrot.slane %v182_v14, 3  ;;  %v207_v21 = vrot.slane %v205_v15, 1  ;;  %v210_v22 = vrot.slane %v208_v16, 2  ;;  %778 = vmatprep.subr.bf16.mxu1 %v837_v26  ;;  %v849_v42 = vld [vmem:[%s1048_s1 + $0xd0] sm:$0xff]   ;;  %v852_v45 = vld [vmem:[%s1048_s1 + $0x8] sm:$0xff]  }
  0x15   : > { %757 = vmatpush3.bf16.msra.mxu0 %v836_v18  ;;  %v184_v23 = vrot.slane %v182_v14, 1  ;;  %v195_v24 = vrot.slane %v180_v13, 3  ;;  %v196_v25 = vrot.slane %v182_v14, 4  ;;  %v851_v44 = vld [vmem:[%s1048_s1 + $0x90] sm:$0xff]   ;;  %v853_v46 = vld [vmem:[%s1048_s1 + $0xc8] sm:$0xff]   ;;  %v854_v47 = vld [vmem:[%s1048_s1 + $0x40] sm:$0xff]  }
  0x16   : > { %v191_v27 = vor.u32 %v190_v20, %v189_v19  ;;  %v211_v28 = vor.u32 %v210_v22, %v207_v21  ;;  %758 = vmatprep.subr.bf16.mxu0 %v838_v29  ;;  %v855_v48 = vld [vmem:[%s1048_s1 + $0x88] sm:$0xff]   ;;  %v856_v49 = vld [vmem:[%s1048_s1] sm:$0xff]   ;;  %v859_v60 = vld [vmem:[%s1048_s1 + $0x118] sm:$0xff]   ;;  %v214_v4 = vrot.slane %v931_v10, 2 }
  0x17   : > { %v185_v31 = vor.u32 %v184_v23, %v180_v13  ;;  %v197_v32 = vor.u32 %v196_v25, %v195_v24  ;;  %779 = vmatpush3.bf16.msra.mxu1 %v839_v30  ;;  %v857_v50 = vld [vmem:[%s1048_s1 + $0xc0] sm:$0xff]   ;;  %v860_v1 = vld [vmem:[%s1048_s1 + $0x110] sm:$0xff]   ;;  %v861_v2 = vld [vmem:[%s1048_s1 + $0x108] sm:$0xff]  }
  0x18   : > { %192 = vrot.lane.b32.xlu0 %v191_v27, %s871_s19  ;;  %212 = vrot.lane.b32.xlu1 %v211_v28, %s871_s19  ;;  %v858_v51 = vld [vmem:[%s1048_s1 + $0x80] sm:$0xff]  }
  0x19   : > { %759 = vmatpush3.bf16.msra.mxu0 %v840_v33  ;;  %780 = vmatprep.subr.bf16.mxu1 %v841_v34  ;;  %v862_v3 = vld [vmem:[%s1048_s1 + $0x100] sm:$0xff]  }
  0x1a   : > { %760 = vmatprep.subr.bf16.mxu0 %v842_v35  ;;  %v712_v15 = vld [vmem:[%s1049_s2] ss:$0 sm:$0xff] }
  0x1b   : > { %781 = vmatpush3.bf16.msra.mxu1 %v843_v36 }
  0x1c   : > { %186 = vrot.lane.b32.xlu0 %v185_v31, %s871_s19  ;;  %198 = vrot.lane.b32.xlu1 %v197_v32, %s871_s19 }
  0x1d   : > { %761 = vmatpush3.bf16.msra.mxu0 %v844_v37  ;;  %782 = vmatprep.subr.bf16.mxu1 %v845_v38 }
  0x1e   : > { %762 = vmatprep.subr.bf16.mxu0 %v846_v39 }
  0x1f   : > { %783 = vmatpush3.bf16.msra.mxu1 %v847_v40 }
  0x20   : > { %784 = vmatprep.subr.bf16.mxu1 %v849_v42 }
  0x21   : > { %763 = vmatpush3.bf16.msra.mxu0 %v848_v41 }
  0x22   : > { %764 = vmatprep.subr.bf16.mxu0 %v850_v43 }
  0x23   : > { %785 = vmatpush3.bf16.msra.mxu1 %v851_v44 }
  0x24   : > { %786 = vmatprep.subr.bf16.mxu1 %v853_v46 }
  0x25   : > { %765 = vmatpush3.bf16.msra.mxu0 %v852_v45 }
  0x26   : > { %766 = vmatprep.subr.bf16.mxu0 %v854_v47 }
  0x27   : > { %787 = vmatpush3.bf16.msra.mxu1 %v855_v48 }
  0x28   : > { %788 = vmatprep.subr.bf16.mxu1 %v857_v50 }
  0x29   : > { %767 = vmatpush3.bf16.msra.mxu0 %v856_v49 }
  0x2a   : > { %801 = vmatprep.subr.bf16.mxu0 %v872_v52 }
  0x2b   : > { %789 = vmatpush3.bf16.msra.mxu1 %v858_v51 }
  0x8a   : > { %v193_v55 = vpop.permute.xlu0 %192  ;;  %v213_v56 = vpop.permute.xlu1 %212 }
  0x8b   : > { %v222_v57 = vsel %vm215_vm0, %v188_v53, %v193_v55  ;;  %v230_v58 = vsel %vm215_vm0, %v203_v54, %v213_v56 }
  0x8c   : > { %561 = vmatprep.mubr.bf16.mxu0 %v222_v57  ;;  %601 = vmatprep.mubr.bf16.mxu1 %v230_v58 }
  0x8e   : > { %v187_v61 = vpop.permute.xlu0 %186  ;;  %v199_v62 = vpop.permute.xlu1 %198 }
  0x8f   : > { %v218_v63 = vsel %vm215_vm0, %v926_v6, %v187_v61  ;;  %v226_v0 = vsel %vm215_vm0, %v194_v59, %v199_v62 }
  0x90   : > { %562 = vmatmul.mubr.bf16.vlgmr.msra.gmra.mxu0 %v218_v63  ;;  %602 = vmatmul.mubr.bf16.vlgmr.msra.gmra.mxu1 %v226_v0 }
  0x91   : > { %802 = vmatpush3.bf16.msra.mxu0 %v859_v60  ;;  %809 = vmatprep.mubr.msk.bf16.mxu0 %vm873_vm1, %v872_v52 }
  0x92   : > { %803 = vmatprep.subr.bf16.mxu0 %v872_v52 }
  0x95   : > { %804 = vmatpush3.bf16.msra.mxu0 %v860_v1 }
  0x96   : > { %805 = vmatprep.subr.bf16.mxu0 %v872_v52 }
  0x99   : > { %806 = vmatpush3.bf16.msra.mxu0 %v861_v2 }
  0x9a   : > { %807 = vmatprep.subr.bf16.mxu0 %v872_v52 }
  0x9d   : > { %808 = vmatpush3.bf16.msra.mxu0 %v862_v3 }
  0xa0   : > { %810 = vmatmul.mubr.msk.bf16.vlgmr.msra.gmra.mxu0 %vm215_vm0, %v214_v4 }
 0x150   : > { %v768_v5 = vpop.f32.mrf.mxu0  ;;  %v790_v6 = vpop.f32.mrf.mxu1 }
 0x152   : > { %v769_v7 = vpop.f32.mrf.mxu0  ;;  %v791_v8 = vpop.f32.mrf.mxu1 }
 0x153   : > { %v770_v14 = vadd.f32 %v769_v7, %v768_v5  ;;  %v792_v17 = vadd.f32 %v791_v8, %v790_v6 }
 0x154   : > { %v771_v9 = vpop.f32.mrf.mxu0  ;;  %v793_v11 = vpop.f32.mrf.mxu1 }
 0x155   : > { %v564_v16 = vadd.f32 %v770_v14, %v712_v15 }
 0x156   : > { %v772_v12 = vpop.f32.mrf.mxu0  ;;  %v794_v13 = vpop.f32.mrf.mxu1 }
 0x157   : > { %v604_v10 = vadd.f32 %v792_v17, %v564_v16 }
 0x160   : > { %v643_v18 = vpop.f32.mrf.mxu0 }
 0x161   : > { %v644_v19 = vadd.f32 %v643_v18, %v604_v10 }
 0x162   : > { %v811_v20 = vpop.f32.mrf.mxu0 }
 0x163   : > { %649 = vst [vmem:[%s168_s21] sm:$0xff] %v644_v19 }
 0x164   : > { %v646_v21 = vpop.f32.mrf.mxu0 }
 0x166   : > { %v812_v22 = vpop.f32.mrf.mxu0 }
 0x167 PF: > { %s13_s12 = sadd.s32 1, %s869_s12  }
 0x168   : > { %p10_p4 = scmp.ge.s32.totalorder %s13_s12, 4  }
 0x16a   :  { %12 = sbr.rel (!%p10_p4) target bundleno = 1 (0x1), region = 62 }

</bundles_post_ra>
